<compile_context>
chip_gen: v7x
topology: tpu7x:2x2x1
jax: 0.10.0
libtpu: 0.0.40
codegen_flags: <defaults>
</compile_context>

<pallas_src>
import functools

import jax
import jax.numpy as jnp
from jax import lax
from jax.experimental import pallas as pl
from jax.experimental.pallas import tpu as pltpu  # noqa: F401  (kept for CompilerParams use at larger shapes)

LANE = 128
SUBLANE = 8


def _ceil_to(x, m):
    return ((x + m - 1) // m) * m


# ----------------------------- fused kernel -----------------------------
def seq2seq_kernel(enc_x_ref, dec_x_ref,
                   w_enc_ref, b_enc_ref,
                   w_dx_ref, w_ds_ref, b_dec_ref,
                   w_out_ref, b_out_ref,
                   out_ref,
                   *, B, S, T, Bp):
    # enc_x_ref : (BSp, Dp)   flattened + padded encoder input (batch*seq rows)
    # dec_x_ref : (BTp, Dp)   flattened + padded decoder input
    # weights   : (Dp,Hp), (1,Hp), (Dp,Hp), (Hp,Hp), (1,Hp), (Hp,Vp), (1,Vp)
    # out_ref   : (BTp, Vp)
    BSp = enc_x_ref.shape[0]
    BTp = dec_x_ref.shape[0]
    BS = B * S
    BT = B * T

    # ---- Encoder: hidden states live only in VMEM, never written to HBM.
    h_enc = jnp.tanh(
        jnp.dot(enc_x_ref[...], w_enc_ref[...],
                preferred_element_type=jnp.float32)
        + b_enc_ref[...])                                        # (BSp, Hp)

    # ---- init_state: per-batch mean over the encoder sequence.
    # Selector matrix built in-kernel (no HBM traffic):
    #   mean_mat[b, b*S + s] = 1/S, zero elsewhere (padded rows/cols zero).
    r = lax.broadcasted_iota(jnp.int32, (Bp, BSp), 0)
    c = lax.broadcasted_iota(jnp.int32, (Bp, BSp), 1)
    mean_mask = (c >= r * S) & (c < (r + 1) * S) & (r < B)
    mean_mat = jnp.where(mean_mask, jnp.float32(1.0 / S), jnp.float32(0.0))

    state = jnp.dot(mean_mat, h_enc,
                    preferred_element_type=jnp.float32)          # (Bp, Hp)
    # Project the decoder-init state once per batch row (M = B, not B*T).
    ctx_b = jnp.dot(state, w_ds_ref[...],
                    preferred_element_type=jnp.float32)          # (Bp, Hp)

    # ---- Broadcast the per-batch context to every decoder row:
    #   bcast[b*T + t, b] = 1, zero elsewhere.
    r2 = lax.broadcasted_iota(jnp.int32, (BTp, Bp), 0)
    c2 = lax.broadcasted_iota(jnp.int32, (BTp, Bp), 1)
    bcast_mask = (r2 >= c2 * T) & (r2 < (c2 + 1) * T)
    bcast = jnp.where(bcast_mask, jnp.float32(1.0), jnp.float32(0.0))

    ctx_rows = jnp.dot(bcast, ctx_b,
                       preferred_element_type=jnp.float32)       # (BTp, Hp)

    # ---- Decoder + output projection.
    h_dec = jnp.tanh(
        jnp.dot(dec_x_ref[...], w_dx_ref[...],
                preferred_element_type=jnp.float32)
        + ctx_rows + b_dec_ref[...])                             # (BTp, Hp)

    out_ref[...] = (
        jnp.dot(h_dec, w_out_ref[...], preferred_element_type=jnp.float32)
        + b_out_ref[...])                                        # (BTp, Vp)


# ------------------------- full EncoderDecoder forward --------------------
def menma_encoder_decoder(enc_x, dec_x, params):
    B, S, D = enc_x.shape
    Bd, T, Dd = dec_x.shape
    assert Bd == B and Dd == D
    H = params["w_enc"].shape[1]
    V = params["w_out"].shape[1]

    f32 = jnp.float32
    Dp = _ceil_to(D, LANE)
    Hp = _ceil_to(H, LANE)
    Vp = _ceil_to(V, LANE)
    BS, BT = B * S, B * T
    BSp = _ceil_to(BS, SUBLANE)
    BTp = _ceil_to(BT, SUBLANE)
    Bp = _ceil_to(B, SUBLANE)

    def pad2(a, rows, cols):
        a = a.astype(f32)
        return jnp.pad(a, ((0, rows - a.shape[0]), (0, cols - a.shape[1])))

    # Collapse batch into the matmul M dimension, pad features to 128 lanes.
    enc2 = pad2(enc_x.reshape(BS, D), BSp, Dp)
    dec2 = pad2(dec_x.reshape(BT, D), BTp, Dp)

    w_enc = pad2(params["w_enc"], Dp, Hp)
    b_enc = pad2(params["b_enc"], 1, Hp)
    w_dx = pad2(params["w_dx"], Dp, Hp)
    w_ds = pad2(params["w_ds"], Hp, Hp)
    b_dec = pad2(params["b_dec"], 1, Hp)
    w_out = pad2(params["w_out"], Hp, Vp)
    b_out = pad2(params["b_out"], 1, Vp)

    kernel = functools.partial(seq2seq_kernel, B=B, S=S, T=T, Bp=Bp)

    # Single invocation: the whole (padded) problem fits trivially in VMEM,
    # so no grid / no per-step pipeline overhead. Zero-padded lanes stay zero
    # and are sliced off below.
    # TODO(synk): for large B*T / H / V, add a grid over the BT rows with a
    # BlockSpec pipeline; unnecessary at these sizes.
    out_pad = pl.pallas_call(
        kernel,
        out_shape=jax.ShapeDtypeStruct((BTp, Vp), f32),
    )(enc2, dec2, w_enc, b_enc, w_dx, w_ds, b_dec, w_out, b_out)

    return out_pad[:BT, :V].reshape(B, T, V)


# ----------------------------- pure-JAX reference --------------------------
def reference_forward(enc_x, dec_x, params):
    h = jnp.tanh(jnp.einsum("bsd,dh->bsh", enc_x, params["w_enc"]) + params["b_enc"])
    state = jnp.mean(h, axis=1)                                   # (B, H)
    ctx_proj = state @ params["w_ds"]                             # (B, H)
    hd = jnp.tanh(jnp.einsum("btd,dh->bth", dec_x, params["w_dx"])
                  + ctx_proj[:, None, :] + params["b_dec"])
    return jnp.einsum("bth,hv->btv", hd, params["w_out"]) + params["b_out"]


if __name__ == "__main__":
    B, S_ENC, S_DEC, D, H, V = 2, 8, 8, 16, 32, 16

    key = jax.random.PRNGKey(0)
    ks = jax.random.split(key, 9)
    enc_x = jax.random.normal(ks[0], (B, S_ENC, D), jnp.float32)
    dec_x = jax.random.normal(ks[1], (B, S_DEC, D), jnp.float32)

    params = {
        "w_enc": 0.1 * jax.random.normal(ks[2], (D, H), jnp.float32),
        "b_enc": 0.1 * jax.random.normal(ks[3], (1, H), jnp.float32),
        "w_dx":  0.1 * jax.random.normal(ks[4], (D, H), jnp.float32),
        "w_ds":  0.1 * jax.random.normal(ks[5], (H, H), jnp.float32),
        "b_dec": 0.1 * jax.random.normal(ks[6], (1, H), jnp.float32),
        "w_out": 0.1 * jax.random.normal(ks[7], (H, V), jnp.float32),
        "b_out": 0.1 * jax.random.normal(ks[8], (1, V), jnp.float32),
    }

    out = menma_encoder_decoder(enc_x, dec_x, params)
    out = jax.block_until_ready(out)

    ref = reference_forward(enc_x, dec_x, params)
    assert out.shape == (B, S_DEC, V)
    assert jnp.allclose(out, ref, atol=1e-5, rtol=1e-5)

    print("KERNEL_OK")
</pallas_src>

<mosaic_0001>
module attributes {stable_mosaic.version = 11 : i64} {
  func.func @seq2seq_kernel(%arg0: memref<16x128xf32, #tpu.memory_space<vmem>>, %arg1: memref<16x128xf32, #tpu.memory_space<vmem>>, %arg2: memref<128x128xf32, #tpu.memory_space<vmem>>, %arg3: memref<1x128xf32, #tpu.memory_space<vmem>>, %arg4: memref<128x128xf32, #tpu.memory_space<vmem>>, %arg5: memref<128x128xf32, #tpu.memory_space<vmem>>, %arg6: memref<1x128xf32, #tpu.memory_space<vmem>>, %arg7: memref<128x128xf32, #tpu.memory_space<vmem>>, %arg8: memref<1x128xf32, #tpu.memory_space<vmem>>, %arg9: memref<16x128xf32, #tpu.memory_space<vmem>>) attributes {dimension_semantics = [], scalar_prefetch = 0 : i64, scratch_operands = 0 : i64, tpu.core_type = #tpu.core_type<tc>} {
    %c0 = arith.constant 0 : index
    %c0_0 = arith.constant 0 : index
    %0 = vector.load %arg0[%c0, %c0_0] : memref<16x128xf32, #tpu.memory_space<vmem>>, vector<16x128xf32>
    %c0_1 = arith.constant 0 : index
    %c0_2 = arith.constant 0 : index
    %1 = vector.load %arg2[%c0_1, %c0_2] : memref<128x128xf32, #tpu.memory_space<vmem>>, vector<128x128xf32>
    %cst = arith.constant dense<0.000000e+00> : vector<16x128xf32>
    %2 = tpu.matmul %0, %1, %cst {dimension_numbers = #tpu.dot_dimension_numbers<[1], [0], [0], [1], [0, 0, 1, 1], [], []>} : vector<16x128xf32>, vector<128x128xf32>, vector<16x128xf32> -> vector<16x128xf32>
    %c0_3 = arith.constant 0 : index
    %c0_4 = arith.constant 0 : index
    %3 = vector.load %arg3[%c0_3, %c0_4] : memref<1x128xf32, #tpu.memory_space<vmem>>, vector<1x128xf32>
    %4 = vector.broadcast %3 : vector<1x128xf32> to vector<16x128xf32>
    %5 = arith.addf %2, %4 : vector<16x128xf32>
    %6 = math.tanh %5 : vector<16x128xf32>
    %7 = tpu.iota {dimensions = array<i32: 0>} : vector<8x16xi32>
    %8 = tpu.iota {dimensions = array<i32: 1>} : vector<8x16xi32>
    %c8_i32 = arith.constant 8 : i32
    %9 = vector.broadcast %c8_i32 : i32 to vector<8x16xi32>
    %10 = arith.muli %7, %9 : vector<8x16xi32>
    %11 = arith.cmpi sge, %8, %10 : vector<8x16xi32>
    %c1_i32 = arith.constant 1 : i32
    %12 = vector.broadcast %c1_i32 : i32 to vector<8x16xi32>
    %13 = arith.addi %7, %12 : vector<8x16xi32>
    %c8_i32_5 = arith.constant 8 : i32
    %14 = vector.broadcast %c8_i32_5 : i32 to vector<8x16xi32>
    %15 = arith.muli %13, %14 : vector<8x16xi32>
    %16 = arith.cmpi slt, %8, %15 : vector<8x16xi32>
    %17 = arith.andi %11, %16 : vector<8x16xi1>
    %c2_i32 = arith.constant 2 : i32
    %18 = vector.broadcast %c2_i32 : i32 to vector<8x16xi32>
    %19 = arith.cmpi slt, %7, %18 : vector<8x16xi32>
    %20 = arith.andi %17, %19 : vector<8x16xi1>
    %cst_6 = arith.constant 1.250000e-01 : f32
    %cst_7 = arith.constant 0.000000e+00 : f32
    %21 = vector.broadcast %cst_6 : f32 to vector<8x16xf32>
    %22 = vector.broadcast %cst_7 : f32 to vector<8x16xf32>
    %23 = arith.select %20, %21, %22 : vector<8x16xi1>, vector<8x16xf32>
    %cst_8 = arith.constant dense<0.000000e+00> : vector<8x128xf32>
    %24 = tpu.matmul %23, %6, %cst_8 {dimension_numbers = #tpu.dot_dimension_numbers<[1], [0], [0], [1], [0, 0, 1, 1], [], []>} : vector<8x16xf32>, vector<16x128xf32>, vector<8x128xf32> -> vector<8x128xf32>
    %c0_9 = arith.constant 0 : index
    %c0_10 = arith.constant 0 : index
    %25 = vector.load %arg5[%c0_9, %c0_10] : memref<128x128xf32, #tpu.memory_space<vmem>>, vector<128x128xf32>
    %cst_11 = arith.constant dense<0.000000e+00> : vector<8x128xf32>
    %26 = tpu.matmul %24, %25, %cst_11 {dimension_numbers = #tpu.dot_dimension_numbers<[1], [0], [0], [1], [0, 0, 1, 1], [], []>} : vector<8x128xf32>, vector<128x128xf32>, vector<8x128xf32> -> vector<8x128xf32>
    %27 = tpu.iota {dimensions = array<i32: 0>} : vector<16x8xi32>
    %28 = tpu.iota {dimensions = array<i32: 1>} : vector<16x8xi32>
    %c8_i32_12 = arith.constant 8 : i32
    %29 = vector.broadcast %c8_i32_12 : i32 to vector<16x8xi32>
    %30 = arith.muli %28, %29 : vector<16x8xi32>
    %31 = arith.cmpi sge, %27, %30 : vector<16x8xi32>
    %c1_i32_13 = arith.constant 1 : i32
    %32 = vector.broadcast %c1_i32_13 : i32 to vector<16x8xi32>
    %33 = arith.addi %28, %32 : vector<16x8xi32>
    %c8_i32_14 = arith.constant 8 : i32
    %34 = vector.broadcast %c8_i32_14 : i32 to vector<16x8xi32>
    %35 = arith.muli %33, %34 : vector<16x8xi32>
    %36 = arith.cmpi slt, %27, %35 : vector<16x8xi32>
    %37 = arith.andi %31, %36 : vector<16x8xi1>
    %cst_15 = arith.constant 1.000000e+00 : f32
    %cst_16 = arith.constant 0.000000e+00 : f32
    %38 = vector.broadcast %cst_15 : f32 to vector<16x8xf32>
    %39 = vector.broadcast %cst_16 : f32 to vector<16x8xf32>
    %40 = arith.select %37, %38, %39 : vector<16x8xi1>, vector<16x8xf32>
    %cst_17 = arith.constant dense<0.000000e+00> : vector<16x128xf32>
    %41 = tpu.matmul %40, %26, %cst_17 {dimension_numbers = #tpu.dot_dimension_numbers<[1], [0], [0], [1], [0, 0, 1, 1], [], []>} : vector<16x8xf32>, vector<8x128xf32>, vector<16x128xf32> -> vector<16x128xf32>
    %c0_18 = arith.constant 0 : index
    %c0_19 = arith.constant 0 : index
    %42 = vector.load %arg1[%c0_18, %c0_19] : memref<16x128xf32, #tpu.memory_space<vmem>>, vector<16x128xf32>
    %c0_20 = arith.constant 0 : index
    %c0_21 = arith.constant 0 : index
    %43 = vector.load %arg4[%c0_20, %c0_21] : memref<128x128xf32, #tpu.memory_space<vmem>>, vector<128x128xf32>
    %cst_22 = arith.constant dense<0.000000e+00> : vector<16x128xf32>
    %44 = tpu.matmul %42, %43, %cst_22 {dimension_numbers = #tpu.dot_dimension_numbers<[1], [0], [0], [1], [0, 0, 1, 1], [], []>} : vector<16x128xf32>, vector<128x128xf32>, vector<16x128xf32> -> vector<16x128xf32>
    %45 = arith.addf %44, %41 : vector<16x128xf32>
    %c0_23 = arith.constant 0 : index
    %c0_24 = arith.constant 0 : index
    %46 = vector.load %arg6[%c0_23, %c0_24] : memref<1x128xf32, #tpu.memory_space<vmem>>, vector<1x128xf32>
    %47 = vector.broadcast %46 : vector<1x128xf32> to vector<16x128xf32>
    %48 = arith.addf %45, %47 : vector<16x128xf32>
    %49 = math.tanh %48 : vector<16x128xf32>
    %c0_25 = arith.constant 0 : index
    %c0_26 = arith.constant 0 : index
    %50 = vector.load %arg7[%c0_25, %c0_26] : memref<128x128xf32, #tpu.memory_space<vmem>>, vector<128x128xf32>
    %cst_27 = arith.constant dense<0.000000e+00> : vector<16x128xf32>
    %51 = tpu.matmul %49, %50, %cst_27 {dimension_numbers = #tpu.dot_dimension_numbers<[1], [0], [0], [1], [0, 0, 1, 1], [], []>} : vector<16x128xf32>, vector<128x128xf32>, vector<16x128xf32> -> vector<16x128xf32>
    %c0_28 = arith.constant 0 : index
    %c0_29 = arith.constant 0 : index
    %52 = vector.load %arg8[%c0_28, %c0_29] : memref<1x128xf32, #tpu.memory_space<vmem>>, vector<1x128xf32>
    %53 = vector.broadcast %52 : vector<1x128xf32> to vector<16x128xf32>
    %54 = arith.addf %51, %53 : vector<16x128xf32>
    %c0_30 = arith.constant 0 : index
    %c0_31 = arith.constant 0 : index
    %55 = vector.load %arg9[%c0_30, %c0_31] : memref<16x128xf32, #tpu.memory_space<vmem>>, vector<16x128xf32>
    tpu.vector_store %arg9[%c0_30, %c0_31], %54 {strides = array<i32>} : memref<16x128xf32, #tpu.memory_space<vmem>>, vector<16x128xf32>,
    return
  }
}

</mosaic_0001>

<bundles_post_ra>
// kernel: tpu_custom_call.1
= control target key start
LH: loop header
LB: loop body
LE: loop exit
PB: predicated region body
PF: predicated region fallthrough
CT: control target
= control target key end

     0   :  { %14 = vsyncpa [#allocation3], 0  ;;  %s1498_s0 = inlined_call_operand.hbm [shape: f32[16,128], index: 0, kind: input, shape index: {}]   ;;  %s1499_s1 = inlined_call_operand.hbm [shape: f32[16,128], index: 1, kind: input, shape index: {}]   ;;  %s1500_s2 = inlined_call_operand.hbm [shape: f32[128,128], index: 2, kind: input, shape index: {}]   ;;  %s1501_s3 = inlined_call_operand.vmem [shape: f32[1,128], index: 3, kind: input, shape index: {}]   ;;  %s1502_s4 = inlined_call_operand.hbm [shape: f32[128,128], index: 4, kind: input, shape index: {}]   ;;  %s1503_s5 = inlined_call_operand.hbm [shape: f32[128,128], index: 5, kind: input, shape index: {}]   ;;  %s1504_s6 = inlined_call_operand.vmem [shape: f32[1,128], index: 6, kind: input, shape index: {}]   ;;  %s1505_s7 = inlined_call_operand.hbm [shape: f32[128,128], index: 7, kind: input, shape index: {}]   ;;  %s1506_s8 = inlined_call_operand.vmem [shape: f32[1,128], index: 8, kind: input, shape index: {}]   ;;  %s1507_s9 = inlined_call_operand.hbm [shape: f32[16,128], index: 9, kind: output, shape index: {}]  }
   0x1   :  { %15 = vsyncpa [#allocation6], 0 }
   0x2   :  { %16 = vsyncpa [#allocation9], 0 }
   0x3   :  { %17 = vsyncpa [#allocation12], 0 }
   0x4   :  { %18 = vsyncpa [#allocation4], 0  ;;  %s1252_s30 = smov [#allocation5]   ;;  %s1253_s11 = smov [#allocation8]  }
   0x5   :  { %s36_s10 = sshll.u32 %s1252_s30, 4  ;;  %s62_s12 = sshll.u32 %s1253_s11, 4  ;;  %s37_s10 = int_to_ptr.vmem [resolvable:$true] %s36_s10  ;;  %s1314_s12 = int_to_ptr.vmem [resolvable:$true] %s62_s12 }
   0x6   :  { %s1088_s15 = scalar_lea.hbm %s1499_s1, 256 }
   0x7   :  { %p1089_p0 = scmp.ne.s32.totalorder %s1499_s1, %s1088_s15  ;;  %p1092_p1 = scmp.lt.u32.totalorder %s1088_s15, %s1499_s1 }
   0x9   :  { %p1094_p2 = pnand %p1092_p1, %p1089_p0 }
   0xb   :  { %1097 = shalt.err (!%p1094_p2)
}
   0xc   :  { %s1098_s20 = scalar_lea.vmem %s37_s10, 256  ;;  %p1103_p4 = scmp.lt.s32.totalorder %s37_s10, %s37_s10 }
   0xd   :  { %p1099_p3 = scmp.ne.s32.totalorder %s37_s10, %s1098_s20  ;;  %p1104_p5 = scmp.lt.s32.totalorder %s1098_s20, %s1098_s20 }
   0xf   :  { %p1105_p6 = por %p1104_p5, %p1103_p4 }
  0x11   :  { %p1106_p7 = pnand %p1105_p6, %p1099_p3 }
  0x13   :  { %1109 = shalt.err (!%p1106_p7)
}
  0x14   :  { %s1254_s21 = smov 128   ;;  %s1255_s22 = smov 8  }
  0x15   :  { %42 = dma.hbm_to_vmem [thread:$0]  %s1499_s1, 256, %s37_s10, [#allocation6], %s1254_s21, %s1254_s21, %s1255_s22  }
  0x16   :  { %s1110_s27 = scalar_lea.hbm %s1502_s4, 2048 }
  0x17   :  { %p1111_p8 = scmp.ne.s32.totalorder %s1502_s4, %s1110_s27  ;;  %p1114_p9 = scmp.lt.u32.totalorder %s1110_s27, %s1502_s4 }
  0x19   :  { %p1116_p10 = pnand %p1114_p9, %p1111_p8 }
  0x1b   :  { %1119 = shalt.err (!%p1116_p10)
}
  0x1c   :  { %s1120_s13 = scalar_lea.vmem %s1314_s12, 2048  ;;  %p1125_p12 = scmp.lt.s32.totalorder %s1314_s12, %s1314_s12 }
  0x1d   :  { %p1121_p11 = scmp.ne.s32.totalorder %s1314_s12, %s1120_s13  ;;  %p1126_p13 = scmp.lt.s32.totalorder %s1120_s13, %s1120_s13 }
  0x1f   :  { %p1127_p0 = por %p1126_p13, %p1125_p12 }
  0x21   :  { %p1128_p1 = pnand %p1127_p0, %p1121_p11 }
  0x23   :  { %1131 = shalt.err (!%p1128_p1)
}
  0x24   :  { %68 = dma.hbm_to_vmem [thread:$0]  %s1502_s4, 2048, %s1314_s12, [#allocation9], %s1254_s21, %s1254_s21, %s1255_s22  }
  0x25   :  { %s1256_s14 = smov [#allocation2]   ;;  %s1257_s16 = smov [#allocation7]  }
  0x26   :  { %s24_s15 = sshll.u32 %s1256_s14, 4  ;;  %s48_s17 = sshll.u32 %s1257_s16, 4  ;;  %s25_s15 = int_to_ptr.vmem [resolvable:$true] %s24_s15  ;;  %s1351_s17 = int_to_ptr.vmem [resolvable:$true] %s48_s17 }
  0x27   :  { %s1132_s20 = scalar_lea.hbm %s1498_s0, 256 }
  0x28   :  { %p1133_p2 = scmp.ne.s32.totalorder %s1498_s0, %s1132_s20  ;;  %p1136_p3 = scmp.lt.u32.totalorder %s1132_s20, %s1498_s0 }
  0x2a   :  { %p1138_p4 = pnand %p1136_p3, %p1133_p2 }
  0x2c   :  { %1141 = shalt.err (!%p1138_p4)
}
  0x2d   :  { %s1142_s4 = scalar_lea.vmem %s25_s15, 256  ;;  %p1147_p6 = scmp.lt.s32.totalorder %s25_s15, %s25_s15 }
  0x2e   :  { %p1143_p5 = scmp.ne.s32.totalorder %s25_s15, %s1142_s4  ;;  %p1148_p7 = scmp.lt.s32.totalorder %s1142_s4, %s1142_s4 }
  0x30   :  { %p1149_p8 = por %p1148_p7, %p1147_p6 }
  0x32   :  { %p1150_p9 = pnand %p1149_p8, %p1143_p5 }
  0x34   :  { %1153 = shalt.err (!%p1150_p9)
}
  0x35   :  { %30 = dma.hbm_to_vmem [thread:$0]  %s1498_s0, 256, %s25_s15, [#allocation3], %s1254_s21, %s1254_s21, %s1255_s22  }
  0x36   :  { %s1154_s30 = scalar_lea.hbm %s1500_s2, 2048 }
  0x37   :  { %p1155_p10 = scmp.ne.s32.totalorder %s1500_s2, %s1154_s30  ;;  %p1158_p11 = scmp.lt.u32.totalorder %s1154_s30, %s1500_s2 }
  0x39   :  { %p1160_p12 = pnand %p1158_p11, %p1155_p10 }
  0x3b   :  { %1163 = shalt.err (!%p1160_p12)
}
  0x3c   :  { %s1164_s14 = scalar_lea.vmem %s1351_s17, 2048  ;;  %p1169_p0 = scmp.lt.s32.totalorder %s1351_s17, %s1351_s17 }
  0x3d   :  { %p1165_p13 = scmp.ne.s32.totalorder %s1351_s17, %s1164_s14  ;;  %p1170_p1 = scmp.lt.s32.totalorder %s1164_s14, %s1164_s14 }
  0x3f   :  { %p1171_p2 = por %p1170_p1, %p1169_p0 }
  0x41   :  { %p1172_p3 = pnand %p1171_p2, %p1165_p13 }
  0x43   :  { %1175 = shalt.err (!%p1172_p3)
}
  0x44   :  { %54 = dma.hbm_to_vmem [thread:$0]  %s1500_s2, 2048, %s1351_s17, [#allocation6], %s1254_s21, %s1254_s21, %s1255_s22  }
  0x45   :  { %s1258_s16 = smov [#allocation10]   ;;  %s1259_s19 = smov [#allocation11]  }
  0x46   :  { %s74_s18 = sshll.u32 %s1258_s16, 4  ;;  %s88_s20 = sshll.u32 %s1259_s19, 4  ;;  %s75_s18 = int_to_ptr.vmem [resolvable:$true] %s74_s18  ;;  %s1388_s20 = int_to_ptr.vmem [resolvable:$true] %s88_s20 }
  0x47   :  { %s1176_s25 = scalar_lea.hbm %s1503_s5, 2048 }
  0x48   :  { %p1177_p4 = scmp.ne.s32.totalorder %s1503_s5, %s1176_s25  ;;  %p1180_p5 = scmp.lt.u32.totalorder %s1176_s25, %s1503_s5 }
  0x4a   :  { %p1182_p6 = pnand %p1180_p5, %p1177_p4 }
  0x4c   :  { %1185 = shalt.err (!%p1182_p6)
}
  0x4d   :  { %s1186_s2 = scalar_lea.vmem %s75_s18, 2048  ;;  %p1191_p8 = scmp.lt.s32.totalorder %s75_s18, %s75_s18 }
  0x4e   :  { %p1187_p7 = scmp.ne.s32.totalorder %s75_s18, %s1186_s2  ;;  %p1192_p9 = scmp.lt.s32.totalorder %s1186_s2, %s1186_s2 }
  0x50   :  { %p1193_p10 = por %p1192_p9, %p1191_p8 }
  0x52   :  { %p1194_p11 = pnand %p1193_p10, %p1187_p7 }
  0x54   :  { %1197 = shalt.err (!%p1194_p11)
}
  0x55   :  { %80 = dma.hbm_to_vmem [thread:$0]  %s1503_s5, 2048, %s75_s18, [#allocation9], %s1254_s21, %s1254_s21, %s1255_s22  }
  0x56   :  { %s1198_s11 = scalar_lea.hbm %s1505_s7, 2048 }
  0x57   :  { %p1199_p12 = scmp.ne.s32.totalorder %s1505_s7, %s1198_s11  ;;  %p1202_p13 = scmp.lt.u32.totalorder %s1198_s11, %s1505_s7 }
  0x59   :  { %p1204_p0 = pnand %p1202_p13, %p1199_p12 }
  0x5b   :  { %1207 = shalt.err (!%p1204_p0)
}
  0x5c   :  { %s1208_s0 = scalar_lea.vmem %s1388_s20, 2048  ;;  %p1213_p2 = scmp.lt.s32.totalorder %s1388_s20, %s1388_s20 }
  0x5d   :  { %p1209_p1 = scmp.ne.s32.totalorder %s1388_s20, %s1208_s0  ;;  %p1214_p3 = scmp.lt.s32.totalorder %s1208_s0, %s1208_s0 }
  0x5f   :  { %p1215_p4 = por %p1214_p3, %p1213_p2 }
  0x61   :  { %p1216_p5 = pnand %p1215_p4, %p1209_p1 }
  0x63   :  { %1219 = shalt.err (!%p1216_p5)
}
  0x64   :  { %94 = dma.hbm_to_vmem [thread:$0]  %s1505_s7, 2048, %s1388_s20, [#allocation12], %s1254_s21, %s1254_s21, %s1255_s22  }
  0x65   :  { %1242 = dma.done.wait [#allocation3], 256  }
  0x66   :  { %1243 = vsyncadd [#allocation3], 4294967040 }
  0x67   :  { %1244 = dma.done.wait [#allocation6], 2304  }
  0x68   :  { %1245 = vsyncadd [#allocation6], 4294964992 }
  0x69   :  { %1246 = dma.done.wait [#allocation9], 4096  }
  0x6a   :  { %1247 = vsyncadd [#allocation9], 4294963200 }
  0x6b   :  { %1248 = dma.done.wait [#allocation12], 2048  }
  0x6c   :  { %1249 = vsyncadd [#allocation12], 4294965248  ;;  %v117_v0 = vld [vmem:[#allocation7] sm:$0xff]  ;;  %v118_v1 = vld [vmem:[#allocation7 + $0x8] sm:$0xff]  ;;  %v1260_v26 = vmov 0.0|0.0   ;;  %vm1261_vm0 = vmmov 0   ;;  %v217_v28 = vlaneseq }
  0x6d   :  { %v119_v2 = vld [vmem:[#allocation7 + $0x10] sm:$0xff]  ;;  %v943_v3 = vpack.c.bf16 %v118_v1, %v117_v0  ;;  %v120_v4 = vld [vmem:[#allocation7 + $0x18] sm:$0xff]  ;;  %v121_v6 = vld [vmem:[#allocation7 + $0x20] sm:$0xff]  ;;  %975 = vmatprep.subr.bf16.mxu1 %v1260_v26  ;;  %v1262_v27 = vmov 0.0   ;;  %vm230_vm6 = vcmask 130048   ;;  %vm402_vm12 = vcmask 64512  }
  0x6e   :  { %v947_v5 = vpack.c.bf16 %v120_v4, %v119_v2  ;;  %v122_v7 = vld [vmem:[#allocation7 + $0x28] sm:$0xff]  ;;  %v115_v9 = vld [vmem:[#allocation2] sm:$0xff]  ;;  %v123_v10 = vld [vmem:[#allocation7 + $0x30] sm:$0xff]  ;;  %830 = vmatprep.mubr.msk.f32.mxu1 %vm1261_vm0, %v1262_v27  ;;  %v1428_v29 = vshrl.u32 %v217_v28, 7  ;;  %v1434_v36 = vand.u32 127, %v217_v28  ;;  %s1263_s23 = smov [#allocation13]  }
  0x6f   :  { %944 = vmatprep.subr.bf16.mxu0 %v943_v3  ;;  %v951_v8 = vpack.c.bf16 %v122_v7, %v121_v6  ;;  %v124_v11 = vld [vmem:[#allocation7 + $0x38] sm:$0xff]  ;;  %823 = vmatprep.mubr.f32.mxu0 %v115_v9  ;;  %v125_v13 = vld [vmem:[#allocation7 + $0x40] sm:$0xff]  ;;  %v126_v14 = vld [vmem:[#allocation7 + $0x48] sm:$0xff]  ;;  %s693_s24 = sshll.u32 %s1263_s23, 4  ;;  %s694_s24 = int_to_ptr.vmem [resolvable:$true] %s693_s24 }
  0x70   :  { %946 = vmatpush3.bf16.msra.mxu0 %v943_v3  ;;  %v955_v12 = vpack.c.bf16 %v124_v11, %v123_v10  ;;  %v959_v15 = vpack.c.bf16 %v126_v14, %v125_v13  ;;  %v127_v16 = vld [vmem:[#allocation7 + $0x50] sm:$0xff]  ;;  %v128_v17 = vld [vmem:[#allocation7 + $0x58] sm:$0xff]  ;;  %v129_v19 = vld [vmem:[#allocation7 + $0x60] sm:$0xff]  ;;  %v223_v32 = vadd.s32 1, %v1428_v29  ;;  %v221_v37 = vmul.u32 8, %v1428_v29  ;;  %p1225_p7 = scmp.lt.s32.totalorder %s694_s24, %s694_s24 }
  0x71   :  { %948 = vmatprep.subr.bf16.mxu0 %v947_v5  ;;  %v963_v18 = vpack.c.bf16 %v128_v17, %v127_v16  ;;  %v130_v20 = vld [vmem:[#allocation7 + $0x68] sm:$0xff]  ;;  %v131_v22 = vld [vmem:[#allocation7 + $0x70] sm:$0xff]  ;;  %v132_v23 = vld [vmem:[#allocation7 + $0x78] sm:$0xff]  ;;  %vm227_vm4 = vcmp.lt.s32.totalorder %v1428_v29, 2  ;;  %v391_v6 = vmul.u32 8, %v1434_v36 }
  0x72   :  { %v967_v21 = vpack.c.bf16 %v130_v20, %v129_v19  ;;  %v971_v24 = vpack.c.bf16 %v132_v23, %v131_v22  ;;  %v116_v25 = vld [vmem:[#allocation2 + $0x8] sm:$0xff]  ;;  %v708_v30 = vld [vmem:[%s1501_s3] ss:$0 sm:$0xff]  ;;  %v224_v38 = vmul.u32 8, %v223_v32  ;;  %vm222_vm1 = vcmp.ge.s32.totalorder %v1434_v36, %v221_v37  ;;  %v306_v46 = vld [vmem:[#allocation10 + $0x10] sm:$0xff] }
  0x73   :  { %v304_v41 = vld [vmem:[#allocation10] sm:$0xff]  ;;  %v305_v42 = vld [vmem:[#allocation10 + $0x8] sm:$0xff]  ;;  %v307_v47 = vld [vmem:[#allocation10 + $0x18] sm:$0xff]  ;;  %vm392_vm7 = vcmp.ge.s32.totalorder %v1428_v29, %v391_v6 }
  0x74   :  { %950 = vmatpush3.bf16.msra.mxu0 %v947_v5  ;;  %vm225_vm2 = vcmp.lt.s32.totalorder %v1434_v36, %v224_v38  ;;  %v979_v45 = vpack.c.bf16 %v305_v42, %v304_v41  ;;  %v982_v48 = vpack.c.bf16 %v307_v47, %v306_v46  ;;  %v308_v49 = vld [vmem:[#allocation10 + $0x20] sm:$0xff]  ;;  %v309_v50 = vld [vmem:[#allocation10 + $0x28] sm:$0xff]  ;;  %v310_v52 = vld [vmem:[#allocation10 + $0x30] sm:$0xff]  ;;  %v394_v5 = vadd.s32 1, %v1434_v36 }
  0x75   :  { %952 = vmatprep.subr.bf16.mxu0 %v951_v8  ;;  %vm226_vm3 = vmand %vm222_vm1, %vm225_vm2  ;;  %v985_v51 = vpack.c.bf16 %v309_v50, %v308_v49  ;;  %v311_v53 = vld [vmem:[#allocation10 + $0x38] sm:$0xff]  ;;  %v312_v55 = vld [vmem:[#allocation10 + $0x40] sm:$0xff] }
  0x76   :  { %vm228_vm5 = vmand %vm226_vm3, %vm227_vm4  ;;  %v988_v54 = vpack.c.bf16 %v311_v53, %v310_v52  ;;  %v313_v56 = vld [vmem:[#allocation10 + $0x48] sm:$0xff]  ;;  %v314_v58 = vld [vmem:[#allocation10 + $0x50] sm:$0xff]  ;;  %v395_v7 = vmul.u32 8, %v394_v5 }
  0x77   :  { %v229_v44 = vsel %vm228_vm5, 0.125, %v1262_v27  ;;  %v991_v57 = vpack.c.bf16 %v313_v56, %v312_v55  ;;  %v315_v59 = vld [vmem:[#allocation10 + $0x58] sm:$0xff]  ;;  %v316_v61 = vld [vmem:[#allocation10 + $0x60] sm:$0xff]  ;;  %v317_v62 = vld [vmem:[#allocation10 + $0x68] sm:$0xff] }
  0x78   :  { %954 = vmatpush3.bf16.msra.mxu0 %v951_v8  ;;  %v994_v60 = vpack.c.bf16 %v315_v59, %v314_v58  ;;  %v997_v63 = vpack.c.bf16 %v317_v62, %v316_v61  ;;  %v318_v0 = vld [vmem:[#allocation10 + $0x70] sm:$0xff]  ;;  %v319_v1 = vld [vmem:[#allocation10 + $0x78] sm:$0xff]  ;;  %v390_v8 = vadd.s32 8, %v1428_v29  ;;  %vm396_vm8 = vcmp.lt.s32.totalorder %v1428_v29, %v395_v7  ;;  %v589_v13 = vld [vmem:[#allocation11 + $0x8] sm:$0xff] }
  0x79   :  { %956 = vmatprep.subr.bf16.mxu0 %v955_v12  ;;  %v1000_v2 = vpack.c.bf16 %v319_v1, %v318_v0  ;;  %vm398_vm9 = vmand %vm392_vm7, %vm396_vm8  ;;  %v590_v14 = vld [vmem:[#allocation11 + $0x10] sm:$0xff]  ;;  %v591_v16 = vld [vmem:[#allocation11 + $0x18] sm:$0xff] }
  0x7a   :  { %vm1456_vm10 = vcmp.ge.s32.totalorder %v390_v8, %v391_v6  ;;  %vm1460_vm11 = vcmp.lt.s32.totalorder %v390_v8, %v395_v7  ;;  %v400_v11 = vsel %vm398_vm9, 1.0, %v1262_v27  ;;  %v1038_v17 = vpack.c.bf16 %v591_v16, %v590_v14  ;;  %v593_v19 = vld [vmem:[#allocation11 + $0x28] sm:$0xff]  ;;  %v595_v22 = vld [vmem:[#allocation11 + $0x38] sm:$0xff]  ;;  %v492_v38 = vld [vmem:[#allocation8 + $0x30] sm:$0xff] }
  0x7b   :  { %vm399_vm13 = vmand %vm1456_vm10, %vm1460_vm11  ;;  %v489_v28 = vld [vmem:[#allocation8 + $0x18] sm:$0xff]  ;;  %v491_v36 = vld [vmem:[#allocation8 + $0x28] sm:$0xff] }
  0x7c   :  { %958 = vmatpush3.bf16.msra.mxu0 %v955_v12  ;;  %v588_v12 = vld [vmem:[#allocation11] sm:$0xff]  ;;  %v495_v41 = vld [vmem:[#allocation8 + $0x48] sm:$0xff]  ;;  %v500_v49 = vld [vmem:[#allocation8 + $0x70] sm:$0xff] }
  0x7d   :  { %960 = vmatprep.subr.bf16.mxu0 %v959_v15  ;;  %v498_v46 = vld [vmem:[#allocation8 + $0x60] sm:$0xff]  ;;  %v499_v47 = vld [vmem:[#allocation8 + $0x68] sm:$0xff]  ;;  %v501_v50 = vld [vmem:[#allocation8 + $0x78] sm:$0xff] }
  0x7e   :  { %v485_v52 = vld [vmem:[#allocation5 + $0x8] sm:$0xff]  ;;  %v596_v53 = vld [vmem:[#allocation11 + $0x40] sm:$0xff]  ;;  %v598_v56 = vld [vmem:[#allocation11 + $0x50] sm:$0xff] }
  0x7f   :  { %v600_v59 = vld [vmem:[#allocation11 + $0x60] sm:$0xff]  ;;  %v602_v61 = vld [vmem:[#allocation11 + $0x70] sm:$0xff] }
  0x80   :  { %962 = vmatpush3.bf16.msra.mxu0 %v959_v15  ;;  %v1034_v15 = vpack.c.bf16 %v589_v13, %v588_v12  ;;  %v712_v1 = vld [vmem:[%s1504_s6] ss:$0 sm:$0xff]  ;;  %s1220_s6 = scalar_lea.vmem %s694_s24, 256 }
  0x81   :  { %964 = vmatprep.subr.bf16.mxu0 %v963_v18  ;;  %v713_v8 = vld [vmem:[%s1506_s8] ss:$0 sm:$0xff]  ;;  %p1221_p6 = scmp.ne.s32.totalorder %s694_s24, %s1220_s6  ;;  %p1226_p8 = scmp.lt.s32.totalorder %s1220_s6, %s1220_s6 }
  0x83   :  { %p1227_p9 = por %p1226_p8, %p1225_p7 }
  0x84   :  { %966 = vmatpush3.bf16.msra.mxu0 %v963_v18  ;;  %v592_v18 = vld [vmem:[#allocation11 + $0x20] sm:$0xff] }
  0x85   :  { %968 = vmatprep.subr.bf16.mxu0 %v967_v21  ;;  %v1042_v20 = vpack.c.bf16 %v593_v19, %v592_v18  ;;  %p1228_p10 = pnand %p1227_p9, %p1221_p6 }
  0x88   :  { %970 = vmatpush3.bf16.msra.mxu0 %v967_v21  ;;  %v594_v21 = vld [vmem:[#allocation11 + $0x30] sm:$0xff] }
  0x89   :  { %972 = vmatprep.subr.bf16.mxu0 %v971_v24  ;;  %v1046_v23 = vpack.c.bf16 %v595_v22, %v594_v21 }
  0x8c   :  { %974 = vmatpush3.bf16.msra.mxu0 %v971_v24  ;;  %v486_v24 = vld [vmem:[#allocation8] sm:$0xff] }
  0x8f   :  { %824 = vmatmul.mubr.f32.vlgmr.msra.gmra.mrb[0].mxu0 %v116_v25  ;;  %v487_v25 = vld [vmem:[#allocation8 + $0x8] sm:$0xff] }
  0x90   :  { %870 = vmatprep.mubr.msk.f32.mxu0 %vm402_vm12, %v400_v11  ;;  %v1002_v29 = vpack.c.bf16 %v487_v25, %v486_v24 }
 0x162   :  { %v825_v31 = vpop.f32.mrb[0].mxu0 }
 0x163   :  { %v212_v33 = vadd.f32 %v825_v31, %v708_v30  ;;  %v206_v34 = vpop.f32.mrb[1].mxu0  ;;  %v401_v31 = vsel %vm399_vm13, 1.0, %v1262_v27 }
 0x164   :  { %v207_v35 = vadd.f32 %v708_v30, %v206_v34  ;;  %v484_v34 = vld [vmem:[#allocation5] sm:$0xff] }
 0x165   :  { %1080 = vtanh.f32 %v212_v33 }
 0x166   :  { %1082 = vtanh.f32 %v207_v35  ;;  %v490_v35 = vld [vmem:[#allocation8 + $0x20] sm:$0xff] }
 0x167   :  { %v1010_v37 = vpack.c.bf16 %v491_v36, %v490_v35 }
 0x16f   :  { %v1081_v39 = vpop.eup %1080 }
 0x170   :  { %v1083_v40 = vpop.eup %1082 }
 0x171   :  { %v976_v43 = vpack.c.bf16 %v1081_v39, %v1083_v40  ;;  %v493_v39 = vld [vmem:[#allocation8 + $0x38] sm:$0xff] }
 0x172   :  { %v1014_v40 = vpack.c.bf16 %v493_v39, %v492_v38 }
 0x173   :  { %977 = vmatpush3.bf16.msra.mxu1 %v976_v43  ;;  %v496_v43 = vld [vmem:[#allocation8 + $0x50] sm:$0xff] }
 0x174   :  { %978 = vmatprep.subr.bf16.mxu1 %v1260_v26 }
 0x176   :  { %831 = vmatmul.mubr.msk.f32.vlgmr.msra.gmra.mrb[0].mxu1 %vm230_vm6, %v229_v44  ;;  %v497_v44 = vld [vmem:[#allocation8 + $0x58] sm:$0xff] }
 0x177   :  { %980 = vmatpush3.bf16.msra.mxu1 %v979_v45  ;;  %865 = vmatprep.mubr.msk.f32.mxu1 %vm1261_vm0, %v1262_v27  ;;  %v494_v27 = vld [vmem:[#allocation8 + $0x40] sm:$0xff]  ;;  %v1022_v45 = vpack.c.bf16 %v497_v44, %v496_v43 }
 0x178   :  { %981 = vmatprep.subr.bf16.mxu1 %v1260_v26  ;;  %v1018_v42 = vpack.c.bf16 %v495_v41, %v494_v27 }
 0x17b   :  { %983 = vmatpush3.bf16.msra.mxu1 %v982_v48  ;;  %v1026_v48 = vpack.c.bf16 %v499_v47, %v498_v46 }
 0x17c   :  { %984 = vmatprep.subr.bf16.mxu1 %v1260_v26 }
 0x17f   :  { %986 = vmatpush3.bf16.msra.mxu1 %v985_v51  ;;  %v1030_v51 = vpack.c.bf16 %v501_v50, %v500_v49 }
 0x180   :  { %987 = vmatprep.subr.bf16.mxu1 %v1260_v26 }
 0x183   :  { %989 = vmatpush3.bf16.msra.mxu1 %v988_v54  ;;  %v597_v54 = vld [vmem:[#allocation11 + $0x48] sm:$0xff] }
 0x184   :  { %990 = vmatprep.subr.bf16.mxu1 %v1260_v26  ;;  %v1050_v55 = vpack.c.bf16 %v597_v54, %v596_v53 }
 0x187   :  { %992 = vmatpush3.bf16.msra.mxu1 %v991_v57  ;;  %v599_v57 = vld [vmem:[#allocation11 + $0x58] sm:$0xff] }
 0x188   :  { %993 = vmatprep.subr.bf16.mxu1 %v1260_v26  ;;  %v1054_v58 = vpack.c.bf16 %v599_v57, %v598_v56 }
 0x18b   :  { %995 = vmatpush3.bf16.msra.mxu1 %v994_v60  ;;  %v601_v60 = vld [vmem:[#allocation11 + $0x68] sm:$0xff] }
 0x18c   :  { %996 = vmatprep.subr.bf16.mxu1 %v1260_v26  ;;  %v1058_v62 = vpack.c.bf16 %v601_v60, %v600_v59 }
 0x18f   :  { %998 = vmatpush3.bf16.msra.mxu1 %v997_v63  ;;  %v603_v63 = vld [vmem:[#allocation11 + $0x78] sm:$0xff] }
 0x190   :  { %999 = vmatprep.subr.bf16.mxu1 %v1260_v26  ;;  %v488_v26 = vld [vmem:[#allocation8 + $0x10] sm:$0xff]  ;;  %v1062_v0 = vpack.c.bf16 %v603_v63, %v602_v61 }
 0x191   :  { %v1006_v33 = vpack.c.bf16 %v489_v28, %v488_v26 }
 0x193   :  { %1001 = vmatpush3.bf16.msra.mxu1 %v1000_v2 }
 0x194   :  { %1035 = vmatprep.subr.bf16.mxu1 %v1034_v15 }
 0x249   :  { %v300_v3 = vpop.f32.mrb[0].mxu1 }
 0x24a   :  { %v832_v4 = vpop.f32.mrb[1].mxu1  ;;  %866 = vmatmul.mubr.f32.vlgmr.msra.gmra.mrb[2].mxu1 %v300_v3 }
 0x24b   :  { %1037 = vmatpush3.bf16.msra.mxu1 %v1034_v15 }
 0x24c   :  { %1039 = vmatprep.subr.bf16.mxu1 %v1038_v17 }
 0x24f   :  { %1041 = vmatpush3.bf16.msra.mxu1 %v1038_v17 }
 0x250   :  { %1043 = vmatprep.subr.bf16.mxu1 %v1042_v20 }
 0x253   :  { %1045 = vmatpush3.bf16.msra.mxu1 %v1042_v20 }
 0x254   :  { %1047 = vmatprep.subr.bf16.mxu1 %v1046_v23 }
 0x257   :  { %1049 = vmatpush3.bf16.msra.mxu1 %v1046_v23 }
 0x258   :  { %1051 = vmatprep.subr.bf16.mxu1 %v1050_v55 }
 0x25b   :  { %1053 = vmatpush3.bf16.msra.mxu1 %v1050_v55 }
 0x25c   :  { %1055 = vmatprep.subr.bf16.mxu1 %v1054_v58 }
 0x25f   :  { %1057 = vmatpush3.bf16.msra.mxu1 %v1054_v58 }
 0x260   :  { %1059 = vmatprep.subr.bf16.mxu1 %v1058_v62 }
 0x263   :  { %1061 = vmatpush3.bf16.msra.mxu1 %v1058_v62 }
 0x264   :  { %1063 = vmatprep.subr.bf16.mxu1 %v1062_v0 }
 0x267   :  { %1065 = vmatpush3.bf16.msra.mxu1 %v1062_v0 }
 0x31d   :  { %v386_v30 = vpop.f32.mrb[2].mxu1 }
 0x31e   :  { %v867_v32 = vpop.f32.mrb[3].mxu1  ;;  %868 = vmatprep.subr.mxu0 %v386_v30 }
 0x31f   :  { %869 = vmatpush3.msra.mxu0 %v386_v30 }
 0x320   :  { %1003 = vmatprep.subr.bf16.mxu0 %v1002_v29  ;;  %871 = vmatmul.mubr.msk.f32.vlgmr.msra.gmra.mrb[2].mxu0 %vm402_vm12, %v401_v31 }
 0x321   :  { %1005 = vmatpush3.bf16.msra.mxu0 %v1002_v29  ;;  %905 = vmatprep.mubr.f32.mxu0 %v484_v34 }
 0x322   :  { %1007 = vmatprep.subr.bf16.mxu0 %v1006_v33 }
 0x325   :  { %1009 = vmatpush3.bf16.msra.mxu0 %v1006_v33 }
 0x326   :  { %1011 = vmatprep.subr.bf16.mxu0 %v1010_v37 }
 0x329   :  { %1013 = vmatpush3.bf16.msra.mxu0 %v1010_v37 }
 0x32a   :  { %1015 = vmatprep.subr.bf16.mxu0 %v1014_v40 }
 0x32d   :  { %1017 = vmatpush3.bf16.msra.mxu0 %v1014_v40 }
 0x32e   :  { %1019 = vmatprep.subr.bf16.mxu0 %v1018_v42 }
 0x331   :  { %1021 = vmatpush3.bf16.msra.mxu0 %v1018_v42 }
 0x332   :  { %1023 = vmatprep.subr.bf16.mxu0 %v1022_v45 }
 0x335   :  { %1025 = vmatpush3.bf16.msra.mxu0 %v1022_v45 }
 0x336   :  { %1027 = vmatprep.subr.bf16.mxu0 %v1026_v48 }
 0x339   :  { %1029 = vmatpush3.bf16.msra.mxu0 %v1026_v48 }
 0x33a   :  { %1031 = vmatprep.subr.bf16.mxu0 %v1030_v51 }
 0x33d   :  { %1033 = vmatpush3.bf16.msra.mxu0 %v1030_v51 }
 0x340   :  { %906 = vmatmul.mubr.f32.vlgmr.msra.gmra.mrb[2].mxu0 %v485_v52 }
 0x413   :  { %v907_v2 = vpop.f32.mrb[2].mxu0 }
 0x414   :  { %v585_v3 = vadd.f32 %v907_v2, %v712_v1  ;;  %v568_v4 = vpop.f32.mrb[3].mxu0 }
 0x415   :  { %v584_v5 = vadd.f32 %v712_v1, %v568_v4 }
 0x417   :  { %1084 = vtanh.f32 %v584_v5 }
 0x418   :  { %1086 = vtanh.f32 %v585_v3 }
 0x421   :  { %v1085_v6 = vpop.eup %1084 }
 0x422   :  { %v1087_v7 = vpop.eup %1086  ;;  %940 = vmatprep.mubr.f32.mxu1 %v1085_v6 }
 0x423   :  { %941 = vmatmul.mubr.f32.vlgmr.msra.gmra.mrb[4].mxu1 %v1087_v7 }
 0x4f6   :  { %v942_v9 = vpop.f32.mrb[4].mxu1 }
 0x4f7   :  { %v683_v10 = vadd.f32 %v942_v9, %v713_v8  ;;  %v677_v11 = vpop.f32.mrb[5].mxu1 }
 0x4f8   :  { %v678_v12 = vadd.f32 %v713_v8, %v677_v11 }
 0x4f9   :  { %687 = vst [vmem:[#allocation13 + $0x8] sm:$0xff] %v683_v10 }
 0x4fa   :  { %686 = vst [vmem:[#allocation13] sm:$0xff] %v678_v12 }
 0x4fb   :  { %1231 = shalt.err (!%p1228_p10)
}
 0x4fc   :  { %s1232_s8 = scalar_lea.hbm %s1507_s9, 256 }
 0x4fd   :  { %p1233_p11 = scmp.ne.s32.totalorder %s1507_s9, %s1232_s8  ;;  %p1236_p12 = scmp.lt.u32.totalorder %s1232_s8, %s1507_s9 }
 0x4ff   :  { %p1238_p13 = pnand %p1236_p12, %p1233_p11 }
 0x501   :  { %1241 = shalt.err (!%p1238_p13)
}
 0x502   :  { %699 = dma.vmem_to_hbm [thread:$0]  %s694_s24, 256, %s1507_s9, [#allocation4], %s1254_s21, %s1254_s21, %s1255_s22  }
 0x503   :  { %1250 = dma.done.wait [#allocation4], 256  }
 0x504   :  { %1251 = vsyncadd [#allocation4], 4294967040 }
 0x505   :  { %703 = vsyncpa [#allocation3], 1 }
 0x506   :  { %704 = vsyncpa [#allocation6], 1 }
 0x507   :  { %705 = vsyncpa [#allocation9], 1 }
 0x508   :  { %706 = vsyncpa [#allocation12], 1 }
 0x509   :  { %707 = vsyncpa [#allocation4], 1 }

</bundles_post_ra>
